<compile_context>
chip_gen: v7x
topology: tpu7x:2x2x1
jax: 0.10.0
libtpu: 0.0.40
codegen_flags: <defaults>
</compile_context>

<pallas_src>
import jax
import jax.numpy as jnp
from jax.experimental import pallas as pl
from jax.experimental.pallas import tpu as pltpu


# ---------------------------------------------------------------------------
# Kernel: fused twin-head MLP in feature-major (batch-on-lanes) layout.
#   obs^T: [F, TB]    act^T: [A, TB]
#   w1o:   [2H, F]    w1a:   [2H, A]    b1: [2H, 1]
#   w2:    [2H, 2H]   (block-diagonal)  b2: [2H, 1]
#   w3:    [2, 2H]    (block-diagonal)  b3: [2, 1]
#   q^T:   [2, TB]    (row 0 = q1, row 1 = q2)
# ---------------------------------------------------------------------------
def critic_fused_kernel(
    obs_t_ref, act_t_ref,
    w1o_ref, w1a_ref, b1_ref,
    w2_ref, b2_ref,
    w3_ref, b3_ref,
    q_ref,
):
    # Layer 1: two dots into one accumulator (== W1^T @ concat([obs, act])^T).
    h = jnp.dot(w1o_ref[...], obs_t_ref[...], preferred_element_type=jnp.float32)
    h = h + jnp.dot(w1a_ref[...], act_t_ref[...], preferred_element_type=jnp.float32)
    h = jnp.maximum(h + b1_ref[...], 0.0)

    # Layer 2: block-diagonal keeps the two heads independent.
    h = h.astype(w2_ref.dtype)  # no-op for f32 weights; bf16 re-feed for MXU
    h = jnp.dot(w2_ref[...], h, preferred_element_type=jnp.float32) + b2_ref[...]
    h = jnp.maximum(h, 0.0)

    # Layer 3: block-diagonal [2, 2H] -> lane-dense [2, TB] output.
    h = h.astype(w3_ref.dtype)
    q = jnp.dot(w3_ref[...], h, preferred_element_type=jnp.float32) + b3_ref[...]
    q_ref[...] = q.astype(q_ref.dtype)


# ---------------------------------------------------------------------------
# One-time parameter packing (call once, NOT per forward).
# PyTorch Linear weights are assumed stored [in, out] so y = x @ W + b.
# ---------------------------------------------------------------------------
def pack_critic_params(params, feature_dim, *, dtype=jnp.float32):
    p1, p2 = params["q1"], params["q2"]
    F = feature_dim
    H = p1["w2"].shape[0]
    H2 = 2 * H

    # Layer 1: heads concatenated along the output axis, then transposed.
    w1o = jnp.concatenate([p1["w1"][:F], p2["w1"][:F]], axis=1).T  # [2H, F]
    w1a = jnp.concatenate([p1["w1"][F:], p2["w1"][F:]], axis=1).T  # [2H, A]
    b1 = jnp.concatenate([p1["b1"], p2["b1"]], axis=1).T           # [2H, 1]

    # Layer 2: block-diagonal [2H_out, 2H_in].
    w2 = jnp.zeros((H2, H2), jnp.float32)
    w2 = w2.at[:H, :H].set(p1["w2"].T).at[H:, H:].set(p2["w2"].T)
    b2 = jnp.concatenate([p1["b2"], p2["b2"]], axis=1).T           # [2H, 1]

    # Layer 3: block-diagonal [2, 2H].
    w3 = jnp.zeros((2, H2), jnp.float32)
    w3 = w3.at[0, :H].set(p1["w3"][:, 0]).at[1, H:].set(p2["w3"][:, 0])
    b3 = jnp.concatenate([p1["b3"], p2["b3"]], axis=1).T           # [2, 1]

    return {
        "w1o": w1o.astype(dtype), "w1a": w1a.astype(dtype), "b1": b1.astype(jnp.float32),
        "w2": w2.astype(dtype), "b2": b2.astype(jnp.float32),
        "w3": w3.astype(dtype), "b3": b3.astype(jnp.float32),
    }


# ---------------------------------------------------------------------------
# Forward wrappers.
# ---------------------------------------------------------------------------
def critic_forward_packed(obs, action, packed, *, block_b=None):
    """obs: [B, F], action: [B, A], packed params -> q^T [2, B] float32."""
    B, F = obs.shape
    A = action.shape[1]
    H2 = packed["w2"].shape[0]
    wdtype = packed["w1o"].dtype

    obs_t = obs.T.astype(wdtype)     # [F, B]
    act_t = action.T.astype(wdtype)  # [A, B]

    # Default: single grid step (this kernel is launch/latency bound at these
    # shapes).  Only shard the batch for very large B (v7x two-TC case), and
    # require lane-aligned blocks — fail loudly rather than silently fall back.
    if block_b is None or block_b >= B:
        tb, grid = B, (1,)
    else:
        if B % block_b != 0 or block_b % 128 != 0:
            raise ValueError("block_b must divide B and be a multiple of 128")
        tb, grid = block_b, (B // block_b,)

    batch_spec = lambda rows: pl.BlockSpec((rows, tb), lambda i: (0, i))
    const_spec = lambda shape: pl.BlockSpec(shape, lambda i: (0, 0))

    q_t = pl.pallas_call(
        critic_fused_kernel,
        out_shape=jax.ShapeDtypeStruct((2, B), jnp.float32),
        grid=grid,
        in_specs=[
            batch_spec(F),           # obs^T
            batch_spec(A),           # action^T
            const_spec((H2, F)),     # w1o
            const_spec((H2, A)),     # w1a
            const_spec((H2, 1)),     # b1
            const_spec((H2, H2)),    # w2 (block-diag)
            const_spec((H2, 1)),     # b2
            const_spec((2, H2)),     # w3 (block-diag)
            const_spec((2, 1)),      # b3
        ],
        out_specs=batch_spec(2),
        compiler_params=pltpu.CompilerParams(
            dimension_semantics=("parallel",)),
    )(obs_t, act_t, packed["w1o"], packed["w1a"], packed["b1"],
      packed["w2"], packed["b2"], packed["w3"], packed["b3"])
    return q_t


def critic_forward(obs, action, packed, *, block_b=None):
    """Mirrors the PyTorch API: returns (q1, q2), each [B, 1] float32."""
    q_t = critic_forward_packed(obs, action, packed, block_b=block_b)
    # Perf-sensitive callers should consume q_t packed; this split is only for
    # API compatibility with the PyTorch module.
    return q_t[0, :, None], q_t[1, :, None]


# ---------------------------------------------------------------------------
# Synthetic params + pure-JAX reference (mirrors the PyTorch module).
# ---------------------------------------------------------------------------
def init_critic_params(key, feature_dim, action_dim, hidden_dim):
    d_in = feature_dim + action_dim

    def linear(key, n_in, n_out):
        kw, _ = jax.random.split(key)
        w = jax.random.normal(kw, (n_in, n_out), jnp.float32) / jnp.sqrt(n_in)
        b = jnp.zeros((1, n_out), jnp.float32)
        return w, b

    keys = jax.random.split(key, 6)
    q1w1, q1b1 = linear(keys[0], d_in, hidden_dim)
    q1w2, q1b2 = linear(keys[1], hidden_dim, hidden_dim)
    q1w3, q1b3 = linear(keys[2], hidden_dim, 1)
    q2w1, q2b1 = linear(keys[3], d_in, hidden_dim)
    q2w2, q2b2 = linear(keys[4], hidden_dim, hidden_dim)
    q2w3, q2b3 = linear(keys[5], hidden_dim, 1)
    return {
        "q1": {"w1": q1w1, "b1": q1b1, "w2": q1w2, "b2": q1b2, "w3": q1w3, "b3": q1b3},
        "q2": {"w1": q2w1, "b1": q2b1, "w2": q2w2, "b2": q2b2, "w3": q2w3, "b3": q2b3},
    }


def critic_reference(obs, action, params):
    x = jnp.concatenate([obs, action], axis=-1).astype(jnp.float32)

    def head(p):
        h = jnp.maximum(x @ p["w1"] + p["b1"], 0.0)
        h = jnp.maximum(h @ p["w2"] + p["b2"], 0.0)
        return h @ p["w3"] + p["b3"]

    return head(params["q1"]), head(params["q2"])


if __name__ == "__main__":
    feature_dim = 24
    action_dim = 8
    hidden_dim = 32

    key = jax.random.PRNGKey(0)
    k_obs, k_act, k_par, k_obs2, k_act2 = jax.random.split(key, 5)
    params = init_critic_params(k_par, feature_dim, action_dim, hidden_dim)

    # Pack ONCE (outside the forward path).
    packed_f32 = pack_critic_params(params, feature_dim)
    packed_bf16 = pack_critic_params(params, feature_dim, dtype=jnp.bfloat16)

    # --- small batch, single grid step, f32 (exact match) ---
    B = 8
    obs = jax.random.normal(k_obs, (B, feature_dim), jnp.float32)
    action = jax.random.normal(k_act, (B, action_dim), jnp.float32)
    q1, q2 = critic_forward(obs, action, packed_f32)
    jax.block_until_ready((q1, q2))
    r1, r2 = critic_reference(obs, action, params)
    assert q1.shape == (B, 1) and q2.shape == (B, 1)
    assert jnp.allclose(q1, r1, atol=1e-5, rtol=1e-5)
    assert jnp.allclose(q2, r2, atol=1e-5, rtol=1e-5)

    # --- large batch, still one grid step (latency-bound regime) ---
    Bl = 512
    obs_l = jax.random.normal(k_obs2, (Bl, feature_dim), jnp.float32)
    act_l = jax.random.normal(k_act2, (Bl, action_dim), jnp.float32)
    r1l, r2l = critic_reference(obs_l, act_l, params)

    q1l, q2l = critic_forward(obs_l, act_l, packed_f32)
    jax.block_until_ready((q1l, q2l))
    assert q1l.shape == (Bl, 1) and q2l.shape == (Bl, 1)
    assert jnp.allclose(q1l, r1l, atol=1e-5, rtol=1e-5)
    assert jnp.allclose(q2l, r2l, atol=1e-5, rtol=1e-5)

    # --- explicit lane-aligned batch sharding path (v7x two-TC case) ---
    q_sh = critic_forward_packed(obs_l, act_l, packed_f32, block_b=256)
    jax.block_until_ready(q_sh)
    assert q_sh.shape == (2, Bl)
    assert jnp.allclose(q_sh[0][:, None], r1l, atol=1e-5, rtol=1e-5)
    assert jnp.allclose(q_sh[1][:, None], r2l, atol=1e-5, rtol=1e-5)

    # --- bf16 operands, f32 accumulate (v6e/v7x MXU-native), loose tolerance ---
    q1b, q2b = critic_forward(obs_l, act_l, packed_bf16)
    jax.block_until_ready((q1b, q2b))
    assert jnp.allclose(q1b, r1l, atol=1e-1, rtol=1e-1)
    assert jnp.allclose(q2b, r2l, atol=1e-1, rtol=1e-1)

    print("KERNEL_OK")
</pallas_src>

<mosaic_0001>
module attributes {stable_mosaic.version = 11 : i64} {
  func.func @critic_fused_kernel(%arg0: i32, %arg1: memref<24x8xf32, #tpu.memory_space<vmem>>, %arg2: memref<8x8xf32, #tpu.memory_space<vmem>>, %arg3: memref<64x24xf32, #tpu.memory_space<vmem>>, %arg4: memref<64x8xf32, #tpu.memory_space<vmem>>, %arg5: memref<64x1xf32, #tpu.memory_space<vmem>>, %arg6: memref<64x64xf32, #tpu.memory_space<vmem>>, %arg7: memref<64x1xf32, #tpu.memory_space<vmem>>, %arg8: memref<2x64xf32, #tpu.memory_space<vmem>>, %arg9: memref<2x1xf32, #tpu.memory_space<vmem>>, %arg10: memref<2x8xf32, #tpu.memory_space<vmem>>) attributes {dimension_semantics = [#tpu.dimension_semantics<parallel>], iteration_bounds = array<i64: 1>, scalar_prefetch = 0 : i64, scratch_operands = 0 : i64, tpu.core_type = #tpu.core_type<tc>, window_params = [{transform_indices = @transform_0, window_bounds = array<i64: 24, 8>}, {transform_indices = @transform_1, window_bounds = array<i64: 8, 8>}, {pipeline_mode = #tpu.pipeline_mode<synchronous>, transform_indices = @transform_2, window_bounds = array<i64: 64, 24>}, {pipeline_mode = #tpu.pipeline_mode<synchronous>, transform_indices = @transform_3, window_bounds = array<i64: 64, 8>}, {pipeline_mode = #tpu.pipeline_mode<synchronous>, transform_indices = @transform_4, window_bounds = array<i64: 64, 1>}, {pipeline_mode = #tpu.pipeline_mode<synchronous>, transform_indices = @transform_5, window_bounds = array<i64: 64, 64>}, {pipeline_mode = #tpu.pipeline_mode<synchronous>, transform_indices = @transform_6, window_bounds = array<i64: 64, 1>}, {pipeline_mode = #tpu.pipeline_mode<synchronous>, transform_indices = @transform_7, window_bounds = array<i64: 2, 64>}, {pipeline_mode = #tpu.pipeline_mode<synchronous>, transform_indices = @transform_8, window_bounds = array<i64: 2, 1>}, {transform_indices = @transform_9, window_bounds = array<i64: 2, 8>}]} {
    %c0 = arith.constant 0 : index
    %c0_0 = arith.constant 0 : index
    %0 = vector.load %arg3[%c0, %c0_0] : memref<64x24xf32, #tpu.memory_space<vmem>>, vector<64x24xf32>
    %c0_1 = arith.constant 0 : index
    %c0_2 = arith.constant 0 : index
    %1 = vector.load %arg1[%c0_1, %c0_2] : memref<24x8xf32, #tpu.memory_space<vmem>>, vector<24x8xf32>
    %cst = arith.constant dense<0.000000e+00> : vector<64x8xf32>
    %2 = tpu.matmul %0, %1, %cst {dimension_numbers = #tpu.dot_dimension_numbers<[1], [0], [0], [1], [0, 0, 1, 1], [], []>} : vector<64x24xf32>, vector<24x8xf32>, vector<64x8xf32> -> vector<64x8xf32>
    %c0_3 = arith.constant 0 : index
    %c0_4 = arith.constant 0 : index
    %3 = vector.load %arg4[%c0_3, %c0_4] : memref<64x8xf32, #tpu.memory_space<vmem>>, vector<64x8xf32>
    %c0_5 = arith.constant 0 : index
    %c0_6 = arith.constant 0 : index
    %4 = vector.load %arg2[%c0_5, %c0_6] : memref<8x8xf32, #tpu.memory_space<vmem>>, vector<8x8xf32>
    %cst_7 = arith.constant dense<0.000000e+00> : vector<64x8xf32>
    %5 = tpu.matmul %3, %4, %cst_7 {dimension_numbers = #tpu.dot_dimension_numbers<[1], [0], [0], [1], [0, 0, 1, 1], [], []>} : vector<64x8xf32>, vector<8x8xf32>, vector<64x8xf32> -> vector<64x8xf32>
    %6 = arith.addf %2, %5 : vector<64x8xf32>
    %c0_8 = arith.constant 0 : index
    %c0_9 = arith.constant 0 : index
    %7 = vector.load %arg5[%c0_8, %c0_9] : memref<64x1xf32, #tpu.memory_space<vmem>>, vector<64x1xf32>
    %8 = vector.broadcast %7 : vector<64x1xf32> to vector<64x8xf32>
    %9 = arith.addf %6, %8 : vector<64x8xf32>
    %cst_10 = arith.constant 0.000000e+00 : f32
    %10 = vector.broadcast %cst_10 : f32 to vector<64x8xf32>
    %11 = arith.maximumf %9, %10 : vector<64x8xf32>
    %c0_11 = arith.constant 0 : index
    %c0_12 = arith.constant 0 : index
    %12 = vector.load %arg6[%c0_11, %c0_12] : memref<64x64xf32, #tpu.memory_space<vmem>>, vector<64x64xf32>
    %cst_13 = arith.constant dense<0.000000e+00> : vector<64x8xf32>
    %13 = tpu.matmul %12, %11, %cst_13 {dimension_numbers = #tpu.dot_dimension_numbers<[1], [0], [0], [1], [0, 0, 1, 1], [], []>} : vector<64x64xf32>, vector<64x8xf32>, vector<64x8xf32> -> vector<64x8xf32>
    %c0_14 = arith.constant 0 : index
    %c0_15 = arith.constant 0 : index
    %14 = vector.load %arg7[%c0_14, %c0_15] : memref<64x1xf32, #tpu.memory_space<vmem>>, vector<64x1xf32>
    %15 = vector.broadcast %14 : vector<64x1xf32> to vector<64x8xf32>
    %16 = arith.addf %13, %15 : vector<64x8xf32>
    %cst_16 = arith.constant 0.000000e+00 : f32
    %17 = vector.broadcast %cst_16 : f32 to vector<64x8xf32>
    %18 = arith.maximumf %16, %17 : vector<64x8xf32>
    %c0_17 = arith.constant 0 : index
    %c0_18 = arith.constant 0 : index
    %19 = vector.load %arg8[%c0_17, %c0_18] : memref<2x64xf32, #tpu.memory_space<vmem>>, vector<2x64xf32>
    %cst_19 = arith.constant dense<0.000000e+00> : vector<2x8xf32>
    %20 = tpu.matmul %19, %18, %cst_19 {dimension_numbers = #tpu.dot_dimension_numbers<[1], [0], [0], [1], [0, 0, 1, 1], [], []>} : vector<2x64xf32>, vector<64x8xf32>, vector<2x8xf32> -> vector<2x8xf32>
    %c0_20 = arith.constant 0 : index
    %c0_21 = arith.constant 0 : index
    %21 = vector.load %arg9[%c0_20, %c0_21] : memref<2x1xf32, #tpu.memory_space<vmem>>, vector<2x1xf32>
    %22 = vector.broadcast %21 : vector<2x1xf32> to vector<2x8xf32>
    %23 = arith.addf %20, %22 : vector<2x8xf32>
    %c0_22 = arith.constant 0 : index
    %c0_23 = arith.constant 0 : index
    %24 = vector.load %arg10[%c0_22, %c0_23] : memref<2x8xf32, #tpu.memory_space<vmem>>, vector<2x8xf32>
    tpu.vector_store %arg10[%c0_22, %c0_23], %23 {strides = array<i32>} : memref<2x8xf32, #tpu.memory_space<vmem>>, vector<2x8xf32>,
    return
  }
  func.func @transform_0(%arg0: i32) -> (i32, i32) {
    %c0_i32 = arith.constant 0 : i32
    %c0_i32_0 = arith.constant 0 : i32
    return %c0_i32, %arg0 : i32, i32
  }
  func.func @transform_1(%arg0: i32) -> (i32, i32) {
    %c0_i32 = arith.constant 0 : i32
    %c0_i32_0 = arith.constant 0 : i32
    return %c0_i32, %arg0 : i32, i32
  }
  func.func @transform_2(%arg0: i32) -> (i32, i32) {
    %c0_i32 = arith.constant 0 : i32
    %c0_i32_0 = arith.constant 0 : i32
    %c0_i32_1 = arith.constant 0 : i32
    return %c0_i32, %c0_i32_0 : i32, i32
  }
  func.func @transform_3(%arg0: i32) -> (i32, i32) {
    %c0_i32 = arith.constant 0 : i32
    %c0_i32_0 = arith.constant 0 : i32
    %c0_i32_1 = arith.constant 0 : i32
    return %c0_i32, %c0_i32_0 : i32, i32
  }
  func.func @transform_4(%arg0: i32) -> (i32, i32) {
    %c0_i32 = arith.constant 0 : i32
    %c0_i32_0 = arith.constant 0 : i32
    %c0_i32_1 = arith.constant 0 : i32
    return %c0_i32, %c0_i32_0 : i32, i32
  }
  func.func @transform_5(%arg0: i32) -> (i32, i32) {
    %c0_i32 = arith.constant 0 : i32
    %c0_i32_0 = arith.constant 0 : i32
    %c0_i32_1 = arith.constant 0 : i32
    return %c0_i32, %c0_i32_0 : i32, i32
  }
  func.func @transform_6(%arg0: i32) -> (i32, i32) {
    %c0_i32 = arith.constant 0 : i32
    %c0_i32_0 = arith.constant 0 : i32
    %c0_i32_1 = arith.constant 0 : i32
    return %c0_i32, %c0_i32_0 : i32, i32
  }
  func.func @transform_7(%arg0: i32) -> (i32, i32) {
    %c0_i32 = arith.constant 0 : i32
    %c0_i32_0 = arith.constant 0 : i32
    %c0_i32_1 = arith.constant 0 : i32
    return %c0_i32, %c0_i32_0 : i32, i32
  }
  func.func @transform_8(%arg0: i32) -> (i32, i32) {
    %c0_i32 = arith.constant 0 : i32
    %c0_i32_0 = arith.constant 0 : i32
    %c0_i32_1 = arith.constant 0 : i32
    return %c0_i32, %c0_i32_0 : i32, i32
  }
  func.func @transform_9(%arg0: i32) -> (i32, i32) {
    %c0_i32 = arith.constant 0 : i32
    %c0_i32_0 = arith.constant 0 : i32
    return %c0_i32, %arg0 : i32, i32
  }
}

</mosaic_0001>

<bundles_post_ra>
// kernel: tpu_custom_call.1
= control target key start
LH: loop header
LB: loop body
LE: loop exit
PB: predicated region body
PF: predicated region fallthrough
CT: control target
= control target key end

     0   :  { %vm53_vm0 = vcmask 64512   ;;  %v887_v7 = vmov 0   ;;  %s1117_s0 = inlined_call_operand.vmem [shape: f32[24,8], index: 0, kind: input, shape index: {}]   ;;  %s1118_s1 = inlined_call_operand.vmem [shape: f32[8,8], index: 1, kind: input, shape index: {}]   ;;  %s1119_s2 = inlined_call_operand.vmem [shape: f32[64,24], index: 2, kind: input, shape index: {}]   ;;  %s1120_s3 = inlined_call_operand.vmem [shape: f32[64,8], index: 3, kind: input, shape index: {}]   ;;  %s1121_s4 = inlined_call_operand.vmem [shape: f32[64,1], index: 4, kind: input, shape index: {}]   ;;  %s1122_s5 = inlined_call_operand.vmem [shape: f32[64,64], index: 5, kind: input, shape index: {}]   ;;  %s1123_s6 = inlined_call_operand.vmem [shape: f32[64,1], index: 6, kind: input, shape index: {}]   ;;  %s1124_s7 = inlined_call_operand.vmem [shape: f32[2,64], index: 7, kind: input, shape index: {}]   ;;  %s1125_s8 = inlined_call_operand.vmem [shape: f32[2,1], index: 8, kind: input, shape index: {}]   ;;  %s1126_s9 = inlined_call_operand.hbm [shape: f32[2,8], index: 9, kind: output, shape index: {}]  }
   0x1   :  { %v52_v0 = vld [vmem:[%s1118_s1] sm:$0xff]  ;;  %v45_v2 = vld [vmem:[%s1120_s3 + $0x8] sm:$0xff]  ;;  %v46_v5 = vld [vmem:[%s1120_s3 + $0x10] sm:$0xff]  ;;  %861 = vset.pattern.permute.xlu0 %v887_v7  ;;  %862 = vset.pattern.permute.xlu1 %v887_v7 }
   0x2   :  { %v44_v1 = vld [vmem:[%s1120_s3] sm:$0xff]  ;;  %737 = vmatprep.subr.mxu0 %v52_v0  ;;  %v42_v4 = vld [vmem:[%s1117_s0 + $0x8] sm:$0xff]  ;;  %v43_v8 = vld [vmem:[%s1117_s0 + $0x10] sm:$0xff] }
   0x3   :  { %739 = vmatprep.mubr.msk.f32.mxu0 %vm53_vm0, %v44_v1  ;;  %v41_v3 = vld [vmem:[%s1117_s0] sm:$0xff]  ;;  %738 = vmatpush3.msra.mxu0 %v52_v0  ;;  %v47_v9 = vld [vmem:[%s1120_s3 + $0x18] sm:$0xff]  ;;  %v315_v12 = vld [vmem:[%s1121_s4 + $0x10] sm:$0xff] }
   0x4   :  { %v816_v6 = vpack.c.bf16 %v42_v4, %v41_v3  ;;  %740 = vmatmul.mubr.msk.f32.vlgmr.msra.gmra.mrb[0].mxu0 %vm53_vm0, %v45_v2  ;;  %v48_v10 = vld [vmem:[%s1120_s3 + $0x20] sm:$0xff]  ;;  %v49_v13 = vld [vmem:[%s1120_s3 + $0x28] sm:$0xff]  ;;  %333 = vperm.xlu1 %862, %v315_v12   ;;  %v50_v15 = vld [vmem:[%s1120_s3 + $0x30] sm:$0xff] }
   0x5   :  { %742 = vmatprep.mubr.msk.f32.mxu0 %vm53_vm0, %v46_v5  ;;  %v313_v11 = vld [vmem:[%s1121_s4] sm:$0xff]  ;;  %v314_v14 = vld [vmem:[%s1121_s4 + $0x8] sm:$0xff]  ;;  %v316_v16 = vld [vmem:[%s1121_s4 + $0x18] sm:$0xff] }
   0x6   :  { %817 = vmatprep.subr.bf16.mxu0 %v816_v6  ;;  %323 = vperm.xlu0 %861, %v313_v11   ;;  %v51_v17 = vld [vmem:[%s1120_s3 + $0x38] sm:$0xff]  ;;  %v317_v18 = vld [vmem:[%s1121_s4 + $0x20] sm:$0xff] }
   0x7   :  { %819 = vmatpush3.bf16.msra.mxu0 %v816_v6 }
   0x8   :  { %755 = vmatprep.subr.mxu0 %v43_v8  ;;  %743 = vmatmul.mubr.msk.f32.gmra.mrb[2].mxu0 %vm53_vm0, %v47_v9 }
   0x9   :  { %745 = vmatprep.mubr.msk.f32.mxu0 %vm53_vm0, %v48_v10  ;;  %338 = vperm.xlu1 %862, %v316_v16  }
   0xa   :  { %328 = vperm.xlu0 %861, %v314_v14  }
   0xb   :  { %756 = vmatpush3.msra.mxu0 %v43_v8 }
   0xc   :  { %746 = vmatmul.mubr.msk.f32.gmra.mrb[4].mxu0 %vm53_vm0, %v49_v13 }
   0xd   :  { %748 = vmatprep.mubr.msk.f32.mxu0 %vm53_vm0, %v50_v15 }
   0xe   :  { %14 = vsyncpa [#allocation3], 0  ;;  %v33_v19 = vld [vmem:[%s1119_s2] sm:$0xff]  ;;  %vm183_vm1 = vcmask 195584   ;;  %v318_v20 = vld [vmem:[%s1121_s4 + $0x28] sm:$0xff]  ;;  %343 = vperm.xlu0 %861, %v317_v18   ;;  %vm433_vm2 = vcmask 523264  }
   0xf   :  { %v34_v21 = vld [vmem:[%s1119_s2 + $0x8] sm:$0xff]  ;;  %v319_v22 = vld [vmem:[%s1121_s4 + $0x30] sm:$0xff]  ;;  %348 = vperm.xlu1 %862, %v318_v20   ;;  %v320_v24 = vld [vmem:[%s1121_s4 + $0x38] sm:$0xff]  ;;  %vm889_vm3 = vmmov 0   ;;  %v890_v20 = vmov 0.0   ;;  %s891_s3 = smov [#allocation2]  }
  0x10   :  { %749 = vmatmul.mubr.msk.f32.gmra.mrb[6].mxu0 %vm53_vm0, %v51_v17  ;;  %v35_v23 = vld [vmem:[%s1119_s2 + $0x10] sm:$0xff]  ;;  %v36_v25 = vld [vmem:[%s1119_s2 + $0x18] sm:$0xff]  ;;  %v385_v26 = vld [vmem:[%s1123_s6] sm:$0xff]  ;;  %s659_s23 = sshll.u32 %s891_s3, 4  ;;  %vm651_vm4 = vcmask 58368   ;;  %s660_s23 = int_to_ptr.vmem [resolvable:$true] %s659_s23 }
  0x11   :  { %757 = vmatprep.mubr.msk.f32.mxu0 %vm183_vm1, %v33_v19  ;;  %v37_v27 = vld [vmem:[%s1119_s2 + $0x20] sm:$0xff]  ;;  %v386_v28 = vld [vmem:[%s1123_s6 + $0x8] sm:$0xff]  ;;  %v387_v30 = vld [vmem:[%s1123_s6 + $0x10] sm:$0xff]  ;;  %v888_v19 = vmov 0.0|0.0   ;;  %s863_s24 = scalar_lea.vmem %s660_s23, 32  ;;  %p868_p1 = scmp.lt.s32.totalorder %s660_s23, %s660_s23 }
  0x12   :  { %353 = vperm.xlu0 %861, %v319_v22   ;;  %v38_v29 = vld [vmem:[%s1119_s2 + $0x28] sm:$0xff]  ;;  %v39_v31 = vld [vmem:[%s1119_s2 + $0x30] sm:$0xff]  ;;  %v388_v32 = vld [vmem:[%s1123_s6 + $0x18] sm:$0xff]  ;;  %p864_p0 = scmp.ne.s32.totalorder %s660_s23, %s863_s24  ;;  %p869_p2 = scmp.lt.s32.totalorder %s863_s24, %s863_s24 }
  0x13   :  { %358 = vperm.xlu1 %862, %v320_v24   ;;  %v40_v33 = vld [vmem:[%s1119_s2 + $0x38] sm:$0xff]  ;;  %v389_v34 = vld [vmem:[%s1123_s6 + $0x20] sm:$0xff]  ;;  %v390_v35 = vld [vmem:[%s1123_s6 + $0x28] sm:$0xff] }
  0x14   :  { %758 = vmatmul.mubr.msk.f32.vlgmr.msra.gmra.mrb[0].mxu0 %vm183_vm1, %v34_v21  ;;  %v391_v36 = vld [vmem:[%s1123_s6 + $0x30] sm:$0xff]  ;;  %v392_v37 = vld [vmem:[%s1123_s6 + $0x38] sm:$0xff]  ;;  %v572_v38 = vld [vmem:[%s1125_s8] sm:$0x3]  ;;  %p870_p3 = por %p869_p2, %p868_p1 }
  0x15   :  { %760 = vmatprep.mubr.msk.f32.mxu0 %vm183_vm1, %v35_v23  ;;  %v377_v39 = vld [vmem:[%s1122_s5] sm:$0xff]  ;;  %v378_v12 = vld [vmem:[%s1122_s5 + $0x8] sm:$0xff]  ;;  %v379_v13 = vld [vmem:[%s1122_s5 + $0x10] sm:$0xff] }
  0x16   :  { %395 = vperm.xlu0 %861, %v385_v26   ;;  %785 = vmatprep.mubr.msk.f32.mxu1 %vm433_vm2, %v377_v39  ;;  %v380_v14 = vld [vmem:[%s1122_s5 + $0x18] sm:$0xff]  ;;  %v381_v15 = vld [vmem:[%s1122_s5 + $0x20] sm:$0xff]  ;;  %v382_v16 = vld [vmem:[%s1122_s5 + $0x28] sm:$0xff]  ;;  %p871_p4 = pnand %p870_p3, %p864_p0 }
  0x17   :  { %400 = vperm.xlu1 %862, %v386_v28   ;;  %v383_v17 = vld [vmem:[%s1122_s5 + $0x30] sm:$0xff]  ;;  %v384_v18 = vld [vmem:[%s1122_s5 + $0x38] sm:$0xff] }
  0x18   :  { %761 = vmatmul.mubr.msk.f32.gmra.mrb[2].mxu0 %vm183_vm1, %v36_v25 }
  0x19   :  { %763 = vmatprep.mubr.msk.f32.mxu0 %vm183_vm1, %v37_v27 }
  0x1a   :  { %405 = vperm.xlu0 %861, %v387_v30  }
  0x1b   :  { %410 = vperm.xlu1 %862, %v388_v32  }
  0x1c   :  { %764 = vmatmul.mubr.msk.f32.gmra.mrb[4].mxu0 %vm183_vm1, %v38_v29 }
  0x1d   :  { %766 = vmatprep.mubr.msk.f32.mxu0 %vm183_vm1, %v39_v31 }
  0x1e   :  { %415 = vperm.xlu0 %861, %v389_v34  }
  0x1f   :  { %420 = vperm.xlu1 %862, %v390_v35  }
  0x20   :  { %767 = vmatmul.mubr.msk.f32.gmra.mrb[6].mxu0 %vm183_vm1, %v40_v33 }
  0x22   :  { %425 = vperm.xlu0 %861, %v391_v36  }
  0x23   :  { %430 = vperm.xlu1 %862, %v392_v37  }
  0x26   :  { %575 = vperm.xlu0 %861, %v572_v38  }
  0x83   :  { %v334_v41 = vpop.permute.xlu1 %333 }
  0x85   :  { %v324_v40 = vpop.permute.xlu0 %323 }
  0x88   :  { %v339_v43 = vpop.permute.xlu1 %338 }
  0x89   :  { %v329_v42 = vpop.permute.xlu0 %328 }
  0x8d   :  { %v344_v56 = vpop.permute.xlu0 %343 }
  0x8e   :  { %v349_v53 = vpop.permute.xlu1 %348 }
  0x91   :  { %v354_v4 = vpop.permute.xlu0 %353 }
  0x92   :  { %v359_v1 = vpop.permute.xlu1 %358 }
  0x95   :  { %v396_v22 = vpop.permute.xlu0 %395 }
  0x96   :  { %v401_v21 = vpop.permute.xlu1 %400 }
  0x99   :  { %v406_v25 = vpop.permute.xlu0 %405 }
  0x9a   :  { %v411_v23 = vpop.permute.xlu1 %410 }
  0x9d   :  { %v416_v37 = vpop.permute.xlu0 %415 }
  0x9e   :  { %v421_v34 = vpop.permute.xlu1 %420 }
  0xe7   :  { %v759_v44 = vpop.f32.mrb[0].mxu0 }
  0xe8   :  { %v362_v45 = vadd.f32 %v759_v44, %v329_v42  ;;  %v274_v46 = vpop.f32.mrb[1].mxu0 }
  0xe9   :  { %v361_v47 = vadd.f32 %v324_v40, %v274_v46  ;;  %v431_v46 = vpop.permute.xlu1 %430 }
  0xea   :  { %v370_v48 = vmax.f32 %v362_v45, 0.0 }
  0xeb   :  { %v369_v49 = vmax.f32 %v361_v47, 0.0  ;;  %v762_v50 = vpop.f32.mrb[2].mxu0 }
  0xec   :  { %v364_v51 = vadd.f32 %v762_v50, %v339_v43  ;;  %v284_v52 = vpop.f32.mrb[3].mxu0 }
  0xed   :  { %v363_v54 = vadd.f32 %v334_v41, %v284_v52  ;;  %v820_v55 = vpack.c.bf16 %v370_v48, %v369_v49  ;;  %v426_v49 = vpop.permute.xlu0 %425 }
  0xee   :  { %v372_v57 = vmax.f32 %v364_v51, 0.0 }
  0xef   :  { %v371_v58 = vmax.f32 %v363_v54, 0.0  ;;  %v765_v59 = vpop.f32.mrb[4].mxu0  ;;  %821 = vmatprep.subr.bf16.mxu1 %v820_v55 }
  0xf0   :  { %v366_v60 = vadd.f32 %v765_v59, %v349_v53  ;;  %v294_v61 = vpop.f32.mrb[5].mxu0  ;;  %823 = vmatpush3.bf16.msra.mxu1 %v820_v55 }
  0xf1   :  { %v824_v62 = vpack.c.bf16 %v372_v57, %v371_v58  ;;  %v365_v63 = vadd.f32 %v344_v56, %v294_v61  ;;  %v571_v57 = vld [vmem:[%s1124_s7] sm:$0x3]  ;;  %v576_v58 = vpop.permute.xlu0 %575 }
  0xf2   :  { %v374_v0 = vmax.f32 %v366_v60, 0.0 }
  0xf3   :  { %v373_v2 = vmax.f32 %v365_v63, 0.0  ;;  %v768_v3 = vpop.f32.mrb[6].mxu0  ;;  %825 = vmatprep.subr.bf16.mxu1 %v824_v62 }
  0xf4   :  { %v368_v5 = vadd.f32 %v768_v3, %v359_v1  ;;  %v304_v6 = vpop.f32.mrb[7].mxu0  ;;  %827 = vmatpush3.bf16.msra.mxu1 %v824_v62 }
  0xf5   :  { %v828_v7 = vpack.c.bf16 %v374_v0, %v373_v2  ;;  %v367_v8 = vadd.f32 %v354_v4, %v304_v6 }
  0xf6   :  { %v376_v9 = vmax.f32 %v368_v5, 0.0 }
  0xf7   :  { %v375_v10 = vmax.f32 %v367_v8, 0.0  ;;  %829 = vmatprep.subr.bf16.mxu1 %v828_v7 }
  0xf8   :  { %831 = vmatpush3.bf16.msra.mxu1 %v828_v7 }
  0xf9   :  { %v832_v11 = vpack.c.bf16 %v376_v9, %v375_v10 }
  0xfb   :  { %833 = vmatprep.subr.bf16.mxu1 %v832_v11 }
  0xfc   :  { %835 = vmatpush3.bf16.msra.mxu1 %v832_v11 }
  0xfd   :  { %836 = vmatprep.subr.bf16.mxu1 %v888_v19 }
  0xff   :  { %786 = vmatmul.mubr.msk.f32.vlgmr.msra.gmra.mrb[0].mxu1 %vm433_vm2, %v378_v12 }
 0x100   :  { %788 = vmatprep.mubr.msk.f32.mxu1 %vm433_vm2, %v379_v13 }
 0x103   :  { %789 = vmatmul.mubr.msk.f32.gmra.mrb[2].mxu1 %vm433_vm2, %v380_v14 }
 0x104   :  { %791 = vmatprep.mubr.msk.f32.mxu1 %vm433_vm2, %v381_v15 }
 0x107   :  { %792 = vmatmul.mubr.msk.f32.gmra.mrb[4].mxu1 %vm433_vm2, %v382_v16 }
 0x108   :  { %794 = vmatprep.mubr.msk.f32.mxu1 %vm433_vm2, %v383_v17 }
 0x10b   :  { %795 = vmatmul.mubr.msk.f32.gmra.mrb[6].mxu1 %vm433_vm2, %v384_v18 }
 0x10c   :  { %813 = vmatprep.mubr.msk.f32.mxu1 %vm889_vm3, %v890_v20 }
 0x1d2   :  { %v787_v24 = vpop.f32.mrb[0].mxu1 }
 0x1d3   :  { %v530_v26 = vadd.f32 %v787_v24, %v401_v21  ;;  %v524_v27 = vpop.f32.mrb[1].mxu1 }
 0x1d4   :  { %v525_v28 = vadd.f32 %v524_v27, %v396_v22 }
 0x1d5   :  { %v564_v29 = vmax.f32 %v530_v26, 0.0 }
 0x1d6   :  { %v563_v30 = vmax.f32 %v525_v28, 0.0  ;;  %v790_v31 = vpop.f32.mrb[2].mxu1 }
 0x1d7   :  { %v540_v32 = vadd.f32 %v790_v31, %v411_v23  ;;  %v534_v33 = vpop.f32.mrb[3].mxu1 }
 0x1d8   :  { %v837_v35 = vpack.c.bf16 %v564_v29, %v563_v30  ;;  %v535_v36 = vadd.f32 %v534_v33, %v406_v25 }
 0x1d9   :  { %v566_v38 = vmax.f32 %v540_v32, 0.0 }
 0x1da   :  { %v565_v39 = vmax.f32 %v535_v36, 0.0  ;;  %v793_v40 = vpop.f32.mrb[4].mxu1  ;;  %838 = vmatpush3.bf16.msra.mxu1 %v837_v35 }
 0x1db   :  { %v550_v41 = vadd.f32 %v793_v40, %v421_v34  ;;  %v544_v42 = vpop.f32.mrb[5].mxu1  ;;  %839 = vmatprep.subr.bf16.mxu1 %v888_v19 }
 0x1dc   :  { %v840_v43 = vpack.c.bf16 %v566_v38, %v565_v39  ;;  %v545_v44 = vadd.f32 %v544_v42, %v416_v37 }
 0x1dd   :  { %v568_v45 = vmax.f32 %v550_v41, 0.0 }
 0x1de   :  { %v567_v47 = vmax.f32 %v545_v44, 0.0  ;;  %v796_v48 = vpop.f32.mrb[6].mxu1  ;;  %841 = vmatpush3.bf16.msra.mxu1 %v840_v43 }
 0x1df   :  { %v560_v50 = vadd.f32 %v796_v48, %v431_v46  ;;  %v554_v51 = vpop.f32.mrb[7].mxu1  ;;  %842 = vmatprep.subr.bf16.mxu1 %v888_v19 }
 0x1e0   :  { %v843_v52 = vpack.c.bf16 %v568_v45, %v567_v47  ;;  %v555_v53 = vadd.f32 %v554_v51, %v426_v49 }
 0x1e1   :  { %v570_v54 = vmax.f32 %v560_v50, 0.0 }
 0x1e2   :  { %v569_v55 = vmax.f32 %v555_v53, 0.0  ;;  %844 = vmatpush3.bf16.msra.mxu1 %v843_v52 }
 0x1e3   :  { %845 = vmatprep.subr.bf16.mxu1 %v888_v19 }
 0x1e4   :  { %v846_v56 = vpack.c.bf16 %v570_v54, %v569_v55 }
 0x1e6   :  { %847 = vmatpush3.bf16.msra.mxu1 %v846_v56 }
 0x1e9   :  { %814 = vmatmul.mubr.msk.f32.vlgmr.msra.gmra.mrb[8].mxu1 %vm433_vm2, %v571_v57 }
 0x2bc   :  { %v647_v59 = vpop.f32.mrb[8].mxu1 }
 0x2bd   :  { %v648_v60 = vadd.f32 %v647_v59, %v576_v58  ;;  %v815_v61 = vpop.f32.mrb[9].mxu1 }
 0x2bf   :  { %652 = vst.msk [vmem:[#allocation2] sm:$0x3] %vm651_vm4, %v648_v60 }
 0x2c0   :  { %874 = shalt.err (!%p871_p4)
}
 0x2c1   :  { %s875_s26 = scalar_lea.hbm %s1126_s9, 32 }
 0x2c2   :  { %p876_p5 = scmp.ne.s32.totalorder %s1126_s9, %s875_s26  ;;  %p879_p6 = scmp.lt.u32.totalorder %s875_s26, %s1126_s9 }
 0x2c4   :  { %p881_p7 = pnand %p879_p6, %p876_p5 }
 0x2c6   :  { %884 = shalt.err (!%p881_p7)
}
 0x2c7   :  { %662 = dma.vmem_to_hbm [thread:$0]  %s660_s23, 32, %s1126_s9, [#allocation3]  }
 0x2c8   :  { %885 = dma.done.wait [#allocation3], 32  }
 0x2c9   :  { %886 = vsyncadd [#allocation3], 4294967264 }
 0x2ca   :  { %666 = vsyncpa [#allocation3], 1 }

</bundles_post_ra>
